<compile_context>
chip_gen: v6e
topology: v6e:2x2x1
jax: 0.10.0
libtpu: 0.0.40
codegen_flags: <defaults>
</compile_context>

<pallas_src>
import jax
import jax.numpy as jnp
from jax.experimental import pallas as pl
from jax.experimental.pallas import tpu as pltpu


# Above this static batch size, use the VPU/XLU (VMEM) path instead of the
# unrolled scalar-ALU (SMEM) path.  Keeps the Python unroll <= 80 compares.
_VPU_BATCH_THRESHOLD = 8


def _make_scalar_kernel(batch: int):
    """Grid-less scalar-ALU kernel for a small static batch (dual-accumulator)."""

    n_betas = batch * 10  # >= 10 since batch >= 1

    def kernel(trans_ref, betas_ref, out_ref):
        # trans_ref: SMEM f32[batch*3]   (row-major flatten of [batch, 3])
        # betas_ref: SMEM f32[batch*10]  (row-major flatten of [batch, 10])
        # out_ref:   SMEM f32[1]

        # --- NaN check over betas: two independent OR chains (x != x), so the
        #     2 scalar-ALU slots per bundle are both kept busy.
        b0 = betas_ref[0]
        b1 = betas_ref[1]
        nan_a = b0 != b0
        nan_b = b1 != b1
        for i in range(2, n_betas):
            v = betas_ref[i]
            c = v != v
            if i % 2 == 0:
                nan_a = jnp.logical_or(nan_a, c)
            else:
                nan_b = jnp.logical_or(nan_b, c)
        has_nan = jnp.logical_or(nan_a, nan_b)

        # --- z-translation check over every row (stride-3 scalar reads),
        #     also dual-accumulated.
        thresh = jnp.float32(0.3)
        z_a = trans_ref[2] < thresh
        if batch > 1:
            z_b = trans_ref[5] < thresh
            for r in range(2, batch):
                c = trans_ref[3 * r + 2] < thresh
                if r % 2 == 0:
                    z_a = jnp.logical_or(z_a, c)
                else:
                    z_b = jnp.logical_or(z_b, c)
            bad_z = jnp.logical_or(z_a, z_b)
        else:
            bad_z = z_a

        out_ref[0] = jnp.where(
            has_nan,
            jnp.float32(-2.0),
            jnp.where(bad_z, jnp.float32(-3.0), jnp.float32(1.0)),
        )

    return kernel


def _vector_kernel(trans_ref, betas_ref, out_ref):
    """VPU/XLU kernel for large batch: vreg compares + keepdims reductions.

    trans_ref: VMEM f32[B, 3], betas_ref: VMEM f32[B, 10], out_ref: VMEM f32[1, 1]
    """
    b = betas_ref[...]                                         # (B, 10)
    nan_mask = (b != b).astype(jnp.float32)                    # NaN -> 1.0
    nan_rows = jnp.max(nan_mask, axis=0, keepdims=True)        # (1, 10)
    has_nan = jnp.max(nan_rows, axis=1, keepdims=True)         # (1, 1)

    z = trans_ref[:, 2:3]                                      # (B, 1)
    bad_mask = (z < jnp.float32(0.3)).astype(jnp.float32)
    bad_z = jnp.max(bad_mask, axis=0, keepdims=True)           # (1, 1)

    out_ref[...] = jnp.where(
        has_nan > 0.0,
        jnp.float32(-2.0),
        jnp.where(bad_z > 0.0, jnp.float32(-3.0), jnp.float32(1.0)),
    )


def fit_validator(translation: jax.Array, rotation: jax.Array, betas: jax.Array) -> jax.Array:
    """Pallas implementation of FitValidator.forward (throw=False semantics).

    Returns a (1,)-shaped float32 validity code: -2.0 / -3.0 / 1.0.
    Intended to be traced inside the caller's jit so the casts/reshapes fuse.
    """
    del rotation  # unused by the forward logic (matches the PyTorch module)

    # Only cast when needed (avoid gratuitous convert ops around a tiny kernel).
    if translation.dtype != jnp.float32:
        translation = translation.astype(jnp.float32)
    if betas.dtype != jnp.float32:
        betas = betas.astype(jnp.float32)

    batch = translation.shape[0]

    if batch >= _VPU_BATCH_THRESHOLD:
        # Vectorized path: full-array VMEM blocks, vreg compares, XLU reduces.
        out = pl.pallas_call(
            _vector_kernel,
            out_shape=jax.ShapeDtypeStruct((1, 1), jnp.float32),
            in_specs=[
                pl.BlockSpec(memory_space=pltpu.VMEM),   # translation (B, 3)
                pl.BlockSpec(memory_space=pltpu.VMEM),   # betas       (B, 10)
            ],
            out_specs=pl.BlockSpec(memory_space=pltpu.VMEM),
        )(translation, betas)
        return out.reshape(1)

    # Scalar path: flattened 1-D SMEM operands, unrolled scalar compares.
    trans_flat = translation.reshape(-1)   # f32[batch*3]
    betas_flat = betas.reshape(-1)         # f32[batch*10]

    out = pl.pallas_call(
        _make_scalar_kernel(batch),
        out_shape=jax.ShapeDtypeStruct((1,), jnp.float32),
        in_specs=[
            pl.BlockSpec(memory_space=pltpu.SMEM),   # translation (scalar reads)
            pl.BlockSpec(memory_space=pltpu.SMEM),   # betas (scalar NaN compares)
        ],
        out_specs=pl.BlockSpec(memory_space=pltpu.SMEM),
    )(trans_flat, betas_flat)
    return out


def fit_validator_ref(translation: jax.Array, rotation: jax.Array, betas: jax.Array) -> jax.Array:
    """Pure-jnp reference (the recommended production path — XLA fuses it for free)."""
    del rotation
    has_nan = jnp.any(jnp.isnan(betas))
    bad_z = jnp.any(translation[:, 2] < 0.3)
    return jnp.where(has_nan, jnp.float32(-2.0),
                     jnp.where(bad_z, jnp.float32(-3.0), jnp.float32(1.0)))


if __name__ == "__main__":
    key = jax.random.PRNGKey(0)
    k_rot, k_betas = jax.random.split(key)

    def check(trans, rot, bet, expected):
        out = jax.block_until_ready(fit_validator(trans, rot, bet))
        assert out.shape == (1,), f"bad shape {out.shape}"
        got = float(out[0])
        ref = float(fit_validator_ref(trans, rot, bet))
        assert got == expected, f"expected {expected}, got {got}"
        assert got == ref, f"kernel {got} != reference {ref}"

    # ---- Scalar (SMEM) path ----
    B = 1
    translation = jnp.array([[0.05, -0.10, 2.0]], dtype=jnp.float32)   # z > 0.3
    rotation = jax.random.normal(k_rot, (B, 3), dtype=jnp.float32)
    betas = jax.random.normal(k_betas, (B, 10), dtype=jnp.float32)

    # Valid case -> 1.0
    check(translation, rotation, betas, 1.0)

    # NaN betas -> -2.0 (takes precedence over bad z, matching PyTorch order)
    betas_nan = betas.at[0, 3].set(jnp.nan)
    check(translation, rotation, betas_nan, -2.0)

    # Too-small z translation -> -3.0
    translation_bad = jnp.array([[0.05, -0.10, 0.1]], dtype=jnp.float32)
    check(translation_bad, rotation, betas, -3.0)

    # Batched case (B=2, still scalar path): any row with bad z -> -3.0
    B2 = 2
    trans2 = jnp.array([[0.0, 0.0, 1.5], [0.0, 0.0, 0.2]], dtype=jnp.float32)
    rot2 = jax.random.normal(k_rot, (B2, 3), dtype=jnp.float32)
    betas2 = jax.random.normal(k_betas, (B2, 10), dtype=jnp.float32)
    check(trans2, rot2, betas2, -3.0)

    # ---- Vectorized (VMEM / VPU) path ----
    B3 = 64
    trans64 = jnp.concatenate(
        [jnp.zeros((B3, 2), jnp.float32), jnp.full((B3, 1), 2.0, jnp.float32)], axis=1)
    rot64 = jax.random.normal(k_rot, (B3, 3), dtype=jnp.float32)
    betas64 = jax.random.normal(k_betas, (B3, 10), dtype=jnp.float32)

    # Valid -> 1.0
    check(trans64, rot64, betas64, 1.0)

    # One NaN beta anywhere -> -2.0
    betas64_nan = betas64.at[37, 7].set(jnp.nan)
    check(trans64, rot64, betas64_nan, -2.0)

    # One row with z < 0.3 -> -3.0
    trans64_bad = trans64.at[50, 2].set(0.1)
    check(trans64_bad, rot64, betas64, -3.0)

    print("KERNEL_OK")
</pallas_src>

<mosaic_0001>
module attributes {stable_mosaic.version = 11 : i64} {
  func.func @kernel(%arg0: memref<3xf32, #tpu.memory_space<smem>>, %arg1: memref<10xf32, #tpu.memory_space<smem>>, %arg2: memref<1xf32, #tpu.memory_space<smem>>) attributes {dimension_semantics = [], scalar_prefetch = 0 : i64, scratch_operands = 0 : i64, tpu.core_type = #tpu.core_type<tc>} {
    %c0 = arith.constant 0 : index
    %0 = memref.load %arg1[%c0] : memref<10xf32, #tpu.memory_space<smem>>
    %c1 = arith.constant 1 : index
    %1 = memref.load %arg1[%c1] : memref<10xf32, #tpu.memory_space<smem>>
    %2 = arith.cmpf one, %0, %0 : f32
    %3 = arith.cmpf one, %1, %1 : f32
    %c2 = arith.constant 2 : index
    %4 = memref.load %arg1[%c2] : memref<10xf32, #tpu.memory_space<smem>>
    %5 = arith.cmpf one, %4, %4 : f32
    %6 = arith.ori %2, %5 : i1
    %c3 = arith.constant 3 : index
    %7 = memref.load %arg1[%c3] : memref<10xf32, #tpu.memory_space<smem>>
    %8 = arith.cmpf one, %7, %7 : f32
    %9 = arith.ori %3, %8 : i1
    %c4 = arith.constant 4 : index
    %10 = memref.load %arg1[%c4] : memref<10xf32, #tpu.memory_space<smem>>
    %11 = arith.cmpf one, %10, %10 : f32
    %12 = arith.ori %6, %11 : i1
    %c5 = arith.constant 5 : index
    %13 = memref.load %arg1[%c5] : memref<10xf32, #tpu.memory_space<smem>>
    %14 = arith.cmpf one, %13, %13 : f32
    %15 = arith.ori %9, %14 : i1
    %c6 = arith.constant 6 : index
    %16 = memref.load %arg1[%c6] : memref<10xf32, #tpu.memory_space<smem>>
    %17 = arith.cmpf one, %16, %16 : f32
    %18 = arith.ori %12, %17 : i1
    %c7 = arith.constant 7 : index
    %19 = memref.load %arg1[%c7] : memref<10xf32, #tpu.memory_space<smem>>
    %20 = arith.cmpf one, %19, %19 : f32
    %21 = arith.ori %15, %20 : i1
    %c8 = arith.constant 8 : index
    %22 = memref.load %arg1[%c8] : memref<10xf32, #tpu.memory_space<smem>>
    %23 = arith.cmpf one, %22, %22 : f32
    %24 = arith.ori %18, %23 : i1
    %c9 = arith.constant 9 : index
    %25 = memref.load %arg1[%c9] : memref<10xf32, #tpu.memory_space<smem>>
    %26 = arith.cmpf one, %25, %25 : f32
    %27 = arith.ori %21, %26 : i1
    %28 = arith.ori %24, %27 : i1
    %c2_0 = arith.constant 2 : index
    %29 = memref.load %arg0[%c2_0] : memref<3xf32, #tpu.memory_space<smem>>
    %cst = arith.constant 3.000000e-01 : f32
    %30 = arith.cmpf olt, %29, %cst : f32
    %cst_1 = arith.constant -3.000000e+00 : f32
    %cst_2 = arith.constant 1.000000e+00 : f32
    %31 = arith.select %30, %cst_1, %cst_2 : f32
    %cst_3 = arith.constant -2.000000e+00 : f32
    %32 = arith.select %28, %cst_3, %31 : f32
    %c0_4 = arith.constant 0 : index
    %33 = memref.load %arg2[%c0_4] : memref<1xf32, #tpu.memory_space<smem>>
    memref.store %32, %arg2[%c0_4] : memref<1xf32, #tpu.memory_space<smem>>
    return
  }
}

</mosaic_0001>

<bundles_post_ra>
// kernel: tpu_custom_call.1
= control target key start
LH: loop header
LB: loop body
LE: loop exit
PB: predicated region body
PF: predicated region fallthrough
CT: control target
= control target key end

     0   :  { %7 = vsyncpa [#allocation3], 0  ;;  %s159_s0 = inlined_call_operand.hbm [shape: f32[3], index: 0, kind: input, shape index: {}]   ;;  %s160_s1 = inlined_call_operand.vmem [shape: f32[10], index: 1, kind: input, shape index: {}]   ;;  %s161_s2 = inlined_call_operand.hbm [shape: f32[1], index: 2, kind: output, shape index: {}]  }
   0x1   :  { %8 = vsyncpa [#allocation5], 0 }
   0x2   :  { %9 = vsyncpa [#allocation4], 0  ;;  %s24_s11 = sshll.u32 %s160_s1, 4  ;;  %s132_s12 = smov [#allocation2]   ;;  %s25_s11 = int_to_ptr.vmem [resolvable:$true] %s24_s11 }
   0x3   :  { %17 = dma.hbm_to_smem %s159_s0, 16, %s132_s12, [#allocation3]  }
   0x4   :  { %s106_s15 = scalar_lea.vmem %s25_s11, 16  ;;  %p111_p1 = scmp.lt.s32.totalorder %s25_s11, %s25_s11 }
   0x5   :  { %p107_p0 = scmp.ne.s32.totalorder %s25_s11, %s106_s15  ;;  %p112_p2 = scmp.lt.s32.totalorder %s106_s15, %s106_s15 }
   0x7   :  { %p113_p3 = por %p112_p2, %p111_p1 }
   0x9   :  { %p114_p4 = pnand %p113_p3, %p107_p0 }
   0xb   :  { %117 = shalt.err (!%p114_p4)
}
   0xc   :  { %s133_s16 = smov [#allocation6]  }
   0xd   :  { %27 = dma.vmem_to_smem %s25_s11, 16, %s133_s16, [#allocation5]  }
   0xe   :  { %126 = dma.done.wait [#allocation3], 16  }
   0xf   :  { %127 = vsyncadd [#allocation3], 4294967280 }
  0x10   :  { %128 = dma.done.wait [#allocation5], 16  }
  0x11   :  { %129 = vsyncadd [#allocation5], 4294967280 }
  0x12   :  { %34 = sfence }
  0x13   :  { %s35_s1 = sld [smem:[#allocation6]]  ;;  %s134_s27 = smov [#allocation7]  }
  0x14   :  { %s85_s17 = sld [smem:[#allocation6 + $0x1]] }
  0x15   :  { %s86_s18 = sld [smem:[#allocation6 + $0x2]] }
  0x16   :  { %s87_s19 = sld [smem:[#allocation6 + $0x3]] }
  0x17   :  { %s88_s0 = sld [smem:[#allocation6 + $0x4]] }
  0x18   :  { %s89_s20 = sld [smem:[#allocation6 + $0x5]] }
  0x19   :  { %p37_p5 = scmp.ne.f32.partialorder %s35_s1, %s35_s1  ;;  %s90_s21 = sld [smem:[#allocation6 + $0x6]] }
  0x1a   :  { %p38_p6 = scmp.ne.f32.partialorder %s85_s17, %s85_s17  ;;  %s91_s22 = sld [smem:[#allocation6 + $0x7]] }
  0x1b   :  { %p40_p7 = scmp.ne.f32.partialorder %s86_s18, %s86_s18  ;;  %s92_s23 = sld [smem:[#allocation6 + $0x8]] }
  0x1c   :  { %p43_p8 = scmp.ne.f32.partialorder %s87_s19, %s87_s19  ;;  %s93_s24 = sld [smem:[#allocation6 + $0x9]] }
  0x1d   :  { %p41_p9 = por %p40_p7, %p37_p5  ;;  %p46_p10 = scmp.ne.f32.partialorder %s88_s0, %s88_s0 }
  0x1e   :  { %p44_p11 = por %p43_p8, %p38_p6  ;;  %p49_p12 = scmp.ne.f32.partialorder %s89_s20, %s89_s20 }
  0x1f   :  { %p47_p13 = por %p46_p10, %p41_p9  ;;  %p52_p0 = scmp.ne.f32.partialorder %s90_s21, %s90_s21 }
  0x20   :  { %p50_p1 = por %p49_p12, %p44_p11  ;;  %p55_p2 = scmp.ne.f32.partialorder %s91_s22, %s91_s22 }
  0x21   :  { %p53_p3 = por %p52_p0, %p47_p13  ;;  %p58_p4 = scmp.ne.f32.partialorder %s92_s23, %s92_s23 }
  0x22   :  { %p56_p5 = por %p55_p2, %p50_p1  ;;  %p61_p7 = scmp.ne.f32.partialorder %s93_s24, %s93_s24 }
  0x23   :  { %s94_s25 = sld [smem:[#allocation2 + $0x2]]  ;;  %p59_p6 = por %p58_p4, %p53_p3 }
  0x24   :  { %p62_p8 = por %p61_p7, %p56_p5 }
  0x26   :  { %p63_p9 = por %p62_p8, %p59_p6 }
  0x29   :  { %p65_p10 = scmp.lt.f32.partialorder %s94_s25, 0.3 }
  0x2b   :  { %s66_s26 = scalar_select %p65_p10, -3.0, 1.0 }
  0x2d   :  { %s163_s26 = smov (%p63_p9, %s66_s26), -2.0 }
  0x2e   :  { %69 = sst [smem:[#allocation7]] %s163_s26 }
  0x2f   :  { %77 = dma.smem_to_hbm %s134_s27, 16, %s161_s2, [#allocation4]  }
  0x30   :  { %130 = dma.done.wait [#allocation4], 16  }
  0x31   :  { %131 = vsyncadd [#allocation4], 4294967280 }
  0x32   :  { %81 = sfence }
  0x33   :  { %82 = vsyncpa [#allocation3], 1 }
  0x34   :  { %83 = vsyncpa [#allocation4], 1 }
  0x35   :  { %84 = vsyncpa [#allocation5], 1 }

</bundles_post_ra>
